<compile_context>
chip_gen: v5e
topology: v5e:2x2
jax: 0.10.0
libtpu: 0.0.40
codegen_flags: <defaults>
</compile_context>

<pallas_src>
import functools

import jax
import jax.numpy as jnp
from jax import lax
from jax.experimental import pallas as pl
from jax.experimental.pallas import tpu as pltpu


def _round_up(n, m):
    return ((n + m - 1) // m) * m


def _cdiv(a, b):
    return -(-a // b)


def _vq_loss_kernel(x_ref, cb_ref, e2_ref, part_ref, *, hw):
    """One grid step: one batch row b, one spatial tile of TL tokens.

    x_ref   : (1, E, TL)   encoder outputs, tokens on the lane axis (native dtype)
    cb_ref  : (K, E)       codebook (native dtype, resident in VMEM)
    e2_ref  : (K, 1)       precomputed ||e_k||^2 in f32
    part_ref: (1, 1, 1, 1) partial SSE for this (batch row, spatial tile)
    """
    i = pl.program_id(1)

    x = x_ref[0]                                   # (E, TL), native dtype
    cb = cb_ref[...]                               # (K, E),  native dtype
    e2 = e2_ref[...]                               # (K, 1),  f32

    xf = x.astype(jnp.float32)
    x2 = jnp.sum(xf * xf, axis=0, keepdims=True)   # (1, TL)  f32, VPU

    # Cross term on the MXU in native precision, f32 accumulate.
    ce = jnp.dot(cb, x, preferred_element_type=jnp.float32)   # (K, TL)

    d = x2 + e2 - 2.0 * ce                         # (K, TL)  squared distances
    dmin = jnp.min(d, axis=0, keepdims=True)       # (1, TL)  XLU sublane reduce
    # dmin == ||x_j - e_{k*}||^2 (expanded form); clamp cancellation negatives.
    dmin = jnp.maximum(dmin, 0.0)

    # Mask tail lanes of a partial final block so the mean uses exactly H*W tokens.
    tl = dmin.shape[-1]
    lane = lax.broadcasted_iota(jnp.int32, (1, tl), 1)
    valid = (i * tl + lane) < hw
    part = jnp.sum(jnp.where(valid, dmin, 0.0))

    part_ref[...] = jnp.broadcast_to(part, part_ref.shape)


def vector_quantizer_forward(x_nchw, codebook, beta, *, lane_tile=2048):
    """Pallas implementation of VectorQuantizer.forward.

    Returns (x_q, loss) exactly like the PyTorch module: x_q equals the
    original NCHW input (the reference rearranges `x`, not `x_q`), and loss is
    the scalar VQ loss = (1 + beta) * mean(||x - e_{k*}||^2).
    """
    B, C, H, W = x_nchw.shape
    K, E = codebook.shape
    assert C == E, "channel dim must equal embed_dim"
    HW = H * W

    # Free view: channel-first input is already token-last friendly. No copy.
    x3 = x_nchw.reshape(B, E, HW)

    # Balanced lane tile: multiple of 128 (or the full extent), minimal tail.
    n_sp = max(1, _cdiv(HW, lane_tile))
    TL = _round_up(_cdiv(HW, n_sp), 128)
    if TL >= HW:
        TL = HW          # single full-extent tile (exempt from the 128 rule)
        n_sp = 1
    else:
        n_sp = _cdiv(HW, TL)

    # Codebook in the matmul's native dtype; ||e||^2 once, in f32.
    cb = codebook if codebook.dtype == x_nchw.dtype else codebook.astype(x_nchw.dtype)
    e2 = jnp.sum(codebook.astype(jnp.float32) ** 2, axis=1, keepdims=True)   # (K, 1)

    kernel = functools.partial(_vq_loss_kernel, hw=HW)

    cost = pl.CostEstimate(
        flops=2 * B * HW * K * E,                              # one MXU matmul
        transcendentals=0,
        bytes_accessed=(B * HW * E * x_nchw.dtype.itemsize
                        + K * E * cb.dtype.itemsize
                        + K * 4 + B * n_sp * 4),
    )

    partials = pl.pallas_call(
        kernel,
        out_shape=jax.ShapeDtypeStruct((B, n_sp, 1, 1), jnp.float32),
        grid_spec=pltpu.PrefetchScalarGridSpec(
            num_scalar_prefetch=0,
            grid=(B, n_sp),
            in_specs=[
                pl.BlockSpec((1, E, TL), lambda b, i: (b, 0, i)),   # x tiles
                pl.BlockSpec((K, E), lambda b, i: (0, 0)),          # codebook
                pl.BlockSpec((K, 1), lambda b, i: (0, 0)),          # ||e||^2
            ],
            out_specs=pl.BlockSpec((1, 1, 1, 1), lambda b, i: (b, i, 0, 0)),
        ),
        compiler_params=pltpu.CompilerParams(
            dimension_semantics=("parallel", "parallel")),
        cost_estimate=cost,
    )(x3, cb, e2)

    sse = jnp.sum(partials)
    # loss = beta * mean((xq-x)^2) + mean((xq-x)^2) == (1+beta) * SSE / (N*E)
    loss = (1.0 + float(beta)) * sse / float(B * HW * E)

    # Reference returns rearrange(x, 'b h w c -> b c h w') == original input.
    return x_nchw, loss


def _reference_forward(x_nchw, codebook, beta):
    """Pure-JAX mirror of the PyTorch forward (for correctness checking)."""
    E = codebook.shape[1]
    x = jnp.transpose(x_nchw, (0, 2, 3, 1))
    xf = x.reshape(-1, E)
    d = (jnp.sum(xf ** 2, axis=1, keepdims=True)
         + jnp.sum(codebook ** 2, axis=1)
         - 2.0 * xf @ codebook.T)
    idx = jnp.argmin(d, axis=1)
    xq = codebook[idx].reshape(x.shape)
    loss = beta * jnp.mean((xq - x) ** 2) + jnp.mean((xq - x) ** 2)
    return x_nchw, loss


if __name__ == "__main__":
    config = dict(num_embed=32, embed_dim=4, beta=0.25)

    key = jax.random.PRNGKey(0)
    kx, kcb = jax.random.split(key)

    # Input: B=2, C=embed_dim=4, H=W=16 (NCHW, like the PyTorch module).
    x = jax.random.normal(kx, (2, config["embed_dim"], 16, 16), dtype=jnp.float32)

    # Codebook init: uniform(-1/num_embed, 1/num_embed), deterministic.
    codebook = jax.random.uniform(
        kcb, (config["num_embed"], config["embed_dim"]), dtype=jnp.float32,
        minval=-1.0 / config["num_embed"], maxval=1.0 / config["num_embed"])

    x_q, loss = vector_quantizer_forward(x, codebook, config["beta"])
    jax.block_until_ready((x_q, loss))

    x_q_ref, loss_ref = _reference_forward(x, codebook, config["beta"])
    assert jnp.array_equal(x_q, x_q_ref)
    # Tolerance deliberately relaxed slightly: the kernel uses the expanded
    # distance form (x2 + e2 - 2ce) as the per-token SSE, which carries a small
    # cancellation error vs the reference's exact (xq - x)^2.
    assert jnp.allclose(loss, loss_ref, rtol=1e-4, atol=1e-5), (loss, loss_ref)

    print("KERNEL_OK")
</pallas_src>

<mosaic_0001>
module attributes {stable_mosaic.version = 11 : i64} {
  func.func @_vq_loss_kernel(%arg0: i32, %arg1: i32, %arg2: memref<1x4x256xf32, #tpu.memory_space<vmem>>, %arg3: memref<32x4xf32, #tpu.memory_space<vmem>>, %arg4: memref<32x1xf32, #tpu.memory_space<vmem>>, %arg5: memref<1x1x1x1xf32, #tpu.memory_space<vmem>>) attributes {dimension_semantics = [#tpu.dimension_semantics<parallel>, #tpu.dimension_semantics<parallel>], iteration_bounds = array<i64: 2, 1>, scalar_prefetch = 0 : i64, scratch_operands = 0 : i64, tpu.core_type = #tpu.core_type<tc>, window_params = [{transform_indices = @transform_0, window_bounds = array<i64: 1, 4, 256>}, {pipeline_mode = #tpu.pipeline_mode<synchronous>, transform_indices = @transform_1, window_bounds = array<i64: 32, 4>}, {pipeline_mode = #tpu.pipeline_mode<synchronous>, transform_indices = @transform_2, window_bounds = array<i64: 32, 1>}, {transform_indices = @transform_3, window_bounds = array<i64: 1, 1, 1, 1>}]} {
    %c0 = arith.constant 0 : index
    %c0_0 = arith.constant 0 : index
    %c0_1 = arith.constant 0 : index
    %0 = vector.load %arg2[%c0, %c0_0, %c0_1] : memref<1x4x256xf32, #tpu.memory_space<vmem>>, vector<1x4x256xf32>
    %1 = vector.shape_cast %0 : vector<1x4x256xf32> to vector<4x256xf32>
    %c0_2 = arith.constant 0 : index
    %c0_3 = arith.constant 0 : index
    %2 = vector.load %arg3[%c0_2, %c0_3] : memref<32x4xf32, #tpu.memory_space<vmem>>, vector<32x4xf32>
    %c0_4 = arith.constant 0 : index
    %c0_5 = arith.constant 0 : index
    %3 = vector.load %arg4[%c0_4, %c0_5] : memref<32x1xf32, #tpu.memory_space<vmem>>, vector<32x1xf32>
    %4 = arith.mulf %1, %1 : vector<4x256xf32>
    %cst = arith.constant dense<0.000000e+00> : vector<256xf32>
    %5 = vector.multi_reduction <add>, %4, %cst [0] : vector<4x256xf32> to vector<256xf32>
    %6 = vector.shape_cast %5 : vector<256xf32> to vector<1x256xf32>
    %cst_6 = arith.constant dense<0.000000e+00> : vector<32x256xf32>
    %7 = tpu.matmul %2, %1, %cst_6 {dimension_numbers = #tpu.dot_dimension_numbers<[1], [0], [0], [1], [0, 0, 1, 1], [], []>} : vector<32x4xf32>, vector<4x256xf32>, vector<32x256xf32> -> vector<32x256xf32>
    %8 = vector.broadcast %6 : vector<1x256xf32> to vector<32x256xf32>
    %9 = vector.broadcast %3 : vector<32x1xf32> to vector<32x256xf32>
    %10 = arith.addf %8, %9 : vector<32x256xf32>
    %cst_7 = arith.constant 2.000000e+00 : f32
    %11 = vector.broadcast %cst_7 : f32 to vector<32x256xf32>
    %12 = arith.mulf %11, %7 : vector<32x256xf32>
    %13 = arith.subf %10, %12 : vector<32x256xf32>
    %cst_8 = arith.constant dense<0x7F800000> : vector<256xf32>
    %14 = vector.multi_reduction <minimumf>, %13, %cst_8 [0] : vector<32x256xf32> to vector<256xf32>
    %15 = vector.shape_cast %14 : vector<256xf32> to vector<1x256xf32>
    %cst_9 = arith.constant 0.000000e+00 : f32
    %16 = vector.broadcast %cst_9 : f32 to vector<1x256xf32>
    %17 = arith.maximumf %15, %16 : vector<1x256xf32>
    %18 = tpu.iota {dimensions = array<i32: 1>} : vector<1x256xi32>
    %c256_i32 = arith.constant 256 : i32
    %19 = arith.muli %arg1, %c256_i32 : i32
    %20 = vector.broadcast %19 : i32 to vector<1x256xi32>
    %21 = arith.addi %20, %18 : vector<1x256xi32>
    %c256_i32_10 = arith.constant 256 : i32
    %22 = vector.broadcast %c256_i32_10 : i32 to vector<1x256xi32>
    %23 = arith.cmpi slt, %21, %22 : vector<1x256xi32>
    %cst_11 = arith.constant 0.000000e+00 : f32
    %24 = vector.broadcast %cst_11 : f32 to vector<1x256xf32>
    %25 = arith.select %23, %17, %24 : vector<1x256xi1>, vector<1x256xf32>
    %26 = vector.shape_cast %25 : vector<1x256xf32> to vector<1x1x256xf32>
    %cst_12 = arith.constant dense<0.000000e+00> : vector<1xf32>
    %27 = vector.multi_reduction <add>, %26, %cst_12 [1, 2] : vector<1x1x256xf32> to vector<1xf32>
    %28 = vector.shape_cast %27 : vector<1xf32> to vector<1x1x1xf32>
    %29 = vector.extract %28[0, 0, 0] : f32 from vector<1x1x1xf32>
    %30 = vector.broadcast %29 : f32 to vector<1x1x1x1xf32>
    %c0_13 = arith.constant 0 : index
    %c0_14 = arith.constant 0 : index
    %c0_15 = arith.constant 0 : index
    %c0_16 = arith.constant 0 : index
    %31 = vector.load %arg5[%c0_13, %c0_14, %c0_15, %c0_16] : memref<1x1x1x1xf32, #tpu.memory_space<vmem>>, vector<1x1x1x1xf32>
    tpu.vector_store %arg5[%c0_13, %c0_14, %c0_15, %c0_16], %30 {strides = array<i32>} : memref<1x1x1x1xf32, #tpu.memory_space<vmem>>, vector<1x1x1x1xf32>,
    return
  }
  func.func @transform_0(%arg0: i32, %arg1: i32) -> (i32, i32, i32) {
    %c0_i32 = arith.constant 0 : i32
    %c0_i32_0 = arith.constant 0 : i32
    return %arg0, %c0_i32, %arg1 : i32, i32, i32
  }
  func.func @transform_1(%arg0: i32, %arg1: i32) -> (i32, i32) {
    %c0_i32 = arith.constant 0 : i32
    %c0_i32_0 = arith.constant 0 : i32
    %c0_i32_1 = arith.constant 0 : i32
    return %c0_i32, %c0_i32_0 : i32, i32
  }
  func.func @transform_2(%arg0: i32, %arg1: i32) -> (i32, i32) {
    %c0_i32 = arith.constant 0 : i32
    %c0_i32_0 = arith.constant 0 : i32
    %c0_i32_1 = arith.constant 0 : i32
    return %c0_i32, %c0_i32_0 : i32, i32
  }
  func.func @transform_3(%arg0: i32, %arg1: i32) -> (i32, i32, i32, i32) {
    %c0_i32 = arith.constant 0 : i32
    %c0_i32_0 = arith.constant 0 : i32
    %c0_i32_1 = arith.constant 0 : i32
    return %arg0, %arg1, %c0_i32, %c0_i32_0 : i32, i32, i32, i32
  }
}

</mosaic_0001>

<bundles_post_ra>
// kernel: tpu_custom_call.1
= control target key start
LH: loop header
LB: loop body
LE: loop exit
PB: predicated region body
PF: predicated region fallthrough
CT: control target
= control target key end

     0   :  { %s571_s12 = smov 0   ;;  %s573_s13 = smov 0   ;;  %s646_s0 = inlined_call_operand.vmem [shape: f32[2,4,256], index: 0, kind: input, shape index: {}]   ;;  %s647_s1 = inlined_call_operand.vmem [shape: f32[32,4], index: 1, kind: input, shape index: {}]   ;;  %s648_s2 = inlined_call_operand.vmem [shape: f32[32,1], index: 2, kind: input, shape index: {}]   ;;  %s649_s3 = inlined_call_operand.vmem [shape: f32[2,1,1,1], index: 3, kind: output, shape index: {}]  }
   0x1   :  { %s575_s14 = smov 0  }
   0x2 LB: > { %s25_s15 = sadd.s32 1, %s544_s13  ;;  %p479_p0 = scmp.ge.s32.totalorder %s548_s14, 1  ;;  %s548_s14 = sphi %s575_s14, %s13_s14   ;;  %s544_s13 = sphi %s573_s13, %s651_s13   ;;  %s540_s12 = sphi %s571_s12, %s650_s12  }
   0x3   : > { %p27_p1 = scmp.ge.s32.totalorder %s25_s15, 2  ;;  %p158_p2 = scmp.lt.s32.totalorder %s548_s14, 3 }
   0x5   : > { %s653_s15 = smov (%p27_p1, %s25_s15), 0  ;;  %p159_p3 = pnand %p479_p0, %p158_p2 }
   0x6   : > { %p188_p4 = scmp.lt.s32.totalorder (!%p159_p3), %s540_s12, 1 }
   0x7   : > { %162 = sbr.rel (%p159_p3) target bundleno = 382 (0x17e), region = 32 }
   0xc   : > { %v550_v0 = vmov 0   ;;  %s655_s12 = smov (!%p188_p4, %s540_s12), 1  ;;  %v210_v1 = vld [vmem:[%s648_s2 + $0x10] sm:$0xff]  ;;  %v208_v2 = vld [vmem:[%s648_s2] sm:$0xff]  ;;  %v211_v5 = vld [vmem:[%s648_s2 + $0x18] sm:$0xff]  ;;  %vm219_vm0 = vcmask 1043456  }
   0xd   : > { %525 = vset.pattern.permute.xlu1 %v550_v0  ;;  %524 = vset.pattern.permute.xlu0 %v550_v0  ;;  %s494_s16 = sshll.u32 %s655_s12, 3  ;;  %v209_v6 = vld [vmem:[%s648_s2 + $0x8] sm:$0xff]  ;;  %v204_v9 = vld [vmem:[%s647_s1] sm:$0xff]  ;;  %vm238_vm1 = vcmask 31744   ;;  %v206_v10 = vld [vmem:[%s647_s1 + $0x10] sm:$0xff]  ;;  %vm388_vm2 = vcmask 1040384   ;;  %s202_s11 = scalar_lea.vmem %s649_s3, %s655_s12 }
   0xe   : > { %s195_s23 = scalar_lea.vmem %s646_s0, %s494_s16  ;;  %325 = vperm.xlu1 %525, %v210_v1   ;;  %315 = vperm.xlu0 %524, %v208_v2   ;;  %v205_v13 = vld [vmem:[%s647_s1 + $0x8] sm:$0xff]  ;;  %v207_v14 = vld [vmem:[%s647_s1 + $0x18] sm:$0xff]  ;;  %vm402_vm3 = vcmask 0  }
   0xf   : > { %v203_v3 = vld [vmem:[%s195_s23] sm:$0xff] }
  0x10   : > { %v212_v4 = vmul.f32 %v203_v3, %v203_v3 }
  0x12   : > { %214 = vst [vmem:[#allocation1] ss:$2 sm:$0xff] %v212_v4 }
  0x16   : > { %330 = vperm.xlu1 %525, %v211_v5   ;;  %320 = vperm.xlu0 %524, %v209_v6  }
  0x19   : > { %v215_v7 = vld.sshfl [vmem:[#allocation1] sm:$0xff pattern:$0x75316420]  ;;  %v216_v8 = vld.sshfl [vmem:[#allocation1 + $0x8] sm:$0xff pattern:$0x75316420] }
  0x1a   : > { %235 = vst [vmem:[#allocation1] ss:$2 sm:$0xff] %v203_v3  ;;  %v220_v15 = vsel %vm219_vm0, %v215_v7, 0.0  ;;  %v227_v16 = vsel %vm219_vm0, %v216_v8, 0.0 }
  0x1b   : > { %v221_v17 = vrot.slane %v220_v15, 4  ;;  %v228_v18 = vrot.slane %v227_v16, 4 }
  0x1d   : > { %v222_v19 = vadd.f32 %v221_v17, %v220_v15  ;;  %v229_v20 = vadd.f32 %v228_v18, %v227_v16 }
  0x1f   : > { %v223_v21 = vrot.slane %v222_v19, 2  ;;  %v230_v22 = vrot.slane %v229_v20, 2 }
  0x21   : > { %v236_v11 = vld.sshfl [vmem:[#allocation1] sm:$0xff pattern:$0x75316420]  ;;  %v237_v12 = vld.sshfl [vmem:[#allocation1 + $0x8] sm:$0xff pattern:$0x75316420]  ;;  %v224_v23 = vadd.f32 %v223_v21, %v222_v19  ;;  %v231_v24 = vadd.f32 %v230_v22, %v229_v20 }
  0x22   : > { %482 = vmatpush.msk.msra.mxu0 %vm219_vm0, %v236_v11  ;;  %495 = vmatpush.msk.msra.mxu2 %vm219_vm0, %v236_v11 }
  0x23   : > { %487 = vmatpush.msk.msra.mxu1 %vm219_vm0, %v237_v12  ;;  %496 = vmatpush.msk.msra.mxu3 %vm219_vm0, %v237_v12  ;;  %v225_v29 = vrot.slane %v224_v23, 1  ;;  %v232_v30 = vrot.slane %v231_v24, 1 }
  0x24   : > { %483 = vmatmul.msk.f32.vlgmr.msra.gmra.mxu0 %vm238_vm1, %v204_v9  ;;  %485 = vmatmul.msk.f32.vlgmr.msra.gmra.mxu2 %vm238_vm1, %v206_v10 }
  0x25   : > { %488 = vmatmul.msk.f32.vlgmr.msra.gmra.mxu1 %vm238_vm1, %v204_v9  ;;  %490 = vmatmul.msk.f32.vlgmr.msra.gmra.mxu3 %vm238_vm1, %v206_v10  ;;  %v226_v32 = vadd.f32 %v225_v29, %v224_v23  ;;  %v233_v34 = vadd.f32 %v232_v30, %v231_v24 }
  0x2c   : > { %484 = vmatmul.msk.f32.gmra.mxu0 %vm238_vm1, %v205_v13  ;;  %486 = vmatmul.msk.f32.gmra.mxu2 %vm238_vm1, %v207_v14 }
  0x2d   : > { %489 = vmatmul.msk.f32.gmra.mxu1 %vm238_vm1, %v205_v13  ;;  %491 = vmatmul.msk.f32.gmra.mxu3 %vm238_vm1, %v207_v14 }
  0x80   : > { %v326_v26 = vpop.permute.xlu1 %325  ;;  %v316_v28 = vpop.permute.xlu0 %315 }
  0x81   : > { %v337_v36 = vadd.f32 %v326_v26, %v226_v32  ;;  %v333_v37 = vadd.f32 %v316_v28, %v226_v32  ;;  %v338_v42 = vadd.f32 %v326_v26, %v233_v34  ;;  %v334_v43 = vadd.f32 %v316_v28, %v233_v34 }
  0x88   : > { %v331_v39 = vpop.permute.xlu1 %330  ;;  %v321_v45 = vpop.permute.xlu0 %320 }
  0x89   : > { %v339_v48 = vadd.f32 %v331_v39, %v226_v32  ;;  %v340_v49 = vadd.f32 %v331_v39, %v233_v34  ;;  %v335_v53 = vadd.f32 %v321_v45, %v226_v32  ;;  %v336_v58 = vadd.f32 %v321_v45, %v233_v34 }
  0xa1   : > { %v272_v25 = vpop.f32.mrf.mxu0 }
  0xa2   : > { %v301_v27 = vpop.f32.mrf.mxu1  ;;  %v341_v38 = vmul.f32 2.0, %v272_v25 }
  0xa3   : > { %v342_v44 = vmul.f32 2.0, %v301_v27 }
  0xa4   : > { %v349_v52 = vsub.f32 %v333_v37, %v341_v38 }
  0xa5   : > { %v350_v57 = vsub.f32 %v334_v43, %v342_v44 }
  0xa7   : > { %v278_v31 = vpop.f32.mrf.mxu2 }
  0xa8   : > { %v307_v33 = vpop.f32.mrf.mxu3  ;;  %v345_v40 = vmul.f32 2.0, %v278_v31 }
  0xa9   : > { %v275_v35 = vpop.f32.mrf.mxu0  ;;  %v346_v46 = vmul.f32 2.0, %v307_v33 }
  0xaa   : > { %v304_v41 = vpop.f32.mrf.mxu1  ;;  %v343_v47 = vmul.f32 2.0, %v275_v35  ;;  %v353_v54 = vsub.f32 %v337_v36, %v345_v40 }
  0xab   : > { %v344_v50 = vmul.f32 2.0, %v304_v41  ;;  %v354_v59 = vsub.f32 %v338_v42, %v346_v46 }
  0xac   : > { %v351_v61 = vsub.f32 %v335_v53, %v343_v47  ;;  %v357_v1 = vmin.f32 %v349_v52, %v353_v54 }
  0xad   : > { %v352_v63 = vsub.f32 %v336_v58, %v344_v50  ;;  %v366_v3 = vmin.f32 %v350_v57, %v354_v59 }
  0xaf   : > { %v281_v51 = vpop.f32.mrf.mxu2 }
  0xb0   : > { %v347_v55 = vmul.f32 2.0, %v281_v51  ;;  %v310_v56 = vpop.f32.mrf.mxu3 }
  0xb1   : > { %v348_v60 = vmul.f32 2.0, %v310_v56 }
  0xb2   : > { %v355_v62 = vsub.f32 %v339_v48, %v347_v55 }
  0xb3   : > { %v356_v0 = vsub.f32 %v340_v49, %v348_v60 }
  0xb4   : > { %v358_v2 = vmin.f32 %v351_v61, %v355_v62 }
  0xb5   : > { %v367_v4 = vmin.f32 %v352_v63, %v356_v0 }
  0xb6   : > { %v359_v5 = vmin.f32 %v357_v1, %v358_v2 }
  0xb7   : > { %v368_v6 = vmin.f32 %v366_v3, %v367_v4 }
  0xb8   : > { %v360_v7 = vrot.slane %v359_v5, 4 }
  0xb9   : > { %v369_v8 = vrot.slane %v368_v6, 4 }
  0xba   : > { %v361_v9 = vmin.f32 %v359_v5, %v360_v7 }
  0xbb   : > { %v370_v10 = vmin.f32 %v368_v6, %v369_v8 }
  0xbc   : > { %v362_v11 = vrot.slane %v361_v9, 2 }
  0xbd   : > { %v371_v12 = vrot.slane %v370_v10, 2 }
  0xbe   : > { %v363_v13 = vmin.f32 %v361_v9, %v362_v11 }
  0xbf   : > { %v372_v14 = vmin.f32 %v370_v10, %v371_v12 }
  0xc0   : > { %v364_v15 = vrot.slane %v363_v13, 1 }
  0xc1   : > { %v373_v16 = vrot.slane %v372_v14, 1 }
  0xc2   : > { %v365_v17 = vmin.f32 %v363_v13, %v364_v15 }
  0xc3   : > { %v374_v18 = vmin.f32 %v372_v14, %v373_v16 }
  0xc4   : > { %v375_v19 = vmax.f32 %v365_v17, 0.0 }
  0xc5   : > { %v376_v20 = vmax.f32 %v374_v18, 0.0 }
  0xc6   : > { %v389_v21 = vsel %vm388_vm2, %v375_v19, 0.0 }
  0xc7   : > { %v390_v22 = vsel %vm388_vm2, %v376_v20, 0.0 }
  0xc8   : > { %v391_v23 = vadd.f32 %v390_v22, %v389_v21 }
  0xca   : > { %392 = vadd.xlane.f32.xlu2 %v391_v23 }
 0x13d   : > { %v393_v24 = vpop.xlane.xlu2 %392 }
 0x13e   : > { %v394_v25 = vrot.slane %v393_v24, 4 }
 0x140   : > { %v395_v26 = vadd.f32 %v394_v25, %v393_v24 }
 0x142   : > { %v396_v27 = vrot.slane %v395_v26, 2 }
 0x144   : > { %v397_v28 = vadd.f32 %v396_v27, %v395_v26 }
 0x146   : > { %v398_v29 = vrot.slane %v397_v28, 1 }
 0x148   : > { %v399_v30 = vadd.f32 %v398_v29, %v397_v28 }
 0x14a   : > { %497 = vpush %v399_v30 }
 0x17b   : > { %s498_s16 = spop %497 }
 0x17c   : > { %v401_v31 = vstv %s498_s16 }
 0x17d   : > { %403 = vst.msk [vmem:[%s202_s11] sm:$0x1] %vm402_vm3, %v401_v31 }
 0x17e PF: > { %s13_s14 = sadd.s32 1, %s548_s14   ;;  %s650_s12 = smov %s544_s13 }
 0x17f   : > { %p10_p5 = scmp.ge.s32.totalorder %s13_s14, 4   ;;  %s651_s13 = smov %s653_s15 }
 0x181   :  { %12 = sbr.rel (!%p10_p5) target bundleno = 2 (0x2), region = 62 }

</bundles_post_ra>
